<compile_context>
chip_gen: v5e
topology: v5e:2x2
jax: 0.10.0
libtpu: 0.0.40
codegen_flags: <defaults>
</compile_context>

<pallas_src>
import functools

import jax
import jax.numpy as jnp
import numpy as np
from jax import lax
from jax.experimental import pallas as pl
from jax.experimental.pallas import tpu as pltpu

_LANE = 128


def _round_up(x, m):
    return (x + m - 1) // m * m


def _pick_band_rows(Ho, target=8):
    """Largest divisor of Ho that is <= target (>= 1)."""
    best = 1
    for th in range(1, min(Ho, target) + 1):
        if Ho % th == 0:
            best = th
    return best


def _conv_bn_kernel(x_ref, w_ref, scale_ref, bias_ref, o_ref, acc_ref, *,
                    KH, KW, TH, Wo, Cin, stride, dilation):
    """One grid step = (batch n, output-row band b).

    x_ref:     (Hp, Wp, Cin)          full padded input image for batch n (VMEM)
    w_ref:     (KH, KW, Cin, Cout_p)  conv weight, Cout zero-padded to lane multiple
    scale_ref: (1, Cout_p)            folded BN scale (f32)
    bias_ref:  (1, Cout_p)            folded BN bias  (f32)
    o_ref:     (TH, Wo, Cout_p)       output row band
    acc_ref:   (TH*Wo, Cout_p) f32    VMEM accumulator scratch
    """
    band = pl.program_id(1)
    row_base = band * (TH * stride)          # first input row used by this band
    span_h = (TH - 1) * stride + 1
    span_w = (Wo - 1) * stride + 1

    first = True
    # Static (traced-once) loop over the KH*KW taps.  Each tap slices its window
    # straight from the VMEM ref (no full-image vreg load) and issues one MXU dot
    # with contraction K = Cin, accumulating into the f32 VMEM scratch.
    for kh in range(KH):
        for kw in range(KW):
            row0 = row_base + kh * dilation   # dynamic (band-dependent) H offset
            col0 = kw * dilation              # static W offset
            if stride == 1:
                patch = x_ref[pl.ds(row0, TH), pl.ds(col0, Wo), :]
            else:
                raw = x_ref[pl.ds(row0, span_h), pl.ds(col0, span_w), :]
                patch = lax.slice(raw, (0, 0, 0), (span_h, span_w, Cin),
                                  (stride, stride, 1))
            # (TH, Wo, Cin) -> (TH*Wo, Cin): layout-preserving when Wo % 8 == 0.
            contrib = jnp.dot(patch.reshape(TH * Wo, Cin), w_ref[kh, kw],
                              preferred_element_type=jnp.float32)
            if first:
                acc_ref[...] = contrib
                first = False
            else:
                acc_ref[...] += contrib

    # Fused BatchNorm (inference): per-channel affine, applied once per band.
    y = acc_ref[...] * scale_ref[...] + bias_ref[...]
    o_ref[...] = y.reshape(o_ref.shape).astype(o_ref.dtype)


def basic_conv2d(x_nchw, weight_oihw, bn_gamma, bn_beta, bn_mean, bn_var,
                 *, stride=1, padding=0, dilation=1, eps=1e-5,
                 compute_dtype=jnp.bfloat16, band_rows=8):
    """Forward of BasicConv2d: bn(conv(x)). Input/output are NCHW (PyTorch)."""
    N, Cin, H, W = x_nchw.shape
    Cout, Cin_w, KH, KW = weight_oihw.shape
    assert Cin == Cin_w

    Ho = (H + 2 * padding - dilation * (KH - 1) - 1) // stride + 1
    Wo = (W + 2 * padding - dilation * (KW - 1) - 1) // stride + 1
    Cout_p = _round_up(Cout, _LANE)
    TH = _pick_band_rows(Ho, band_rows)
    n_bands = Ho // TH

    # --- glue (plain JAX): layout, pad, BN folding, dtype casts ---
    x_nhwc = jnp.transpose(x_nchw, (0, 2, 3, 1))
    x_pad = jnp.pad(x_nhwc, ((0, 0), (padding, padding), (padding, padding), (0, 0)))
    x_pad = x_pad.astype(compute_dtype)
    Hp, Wp = x_pad.shape[1], x_pad.shape[2]

    w_hwio = jnp.transpose(weight_oihw, (2, 3, 1, 0))          # (KH, KW, Cin, Cout)
    w_hwio = jnp.pad(w_hwio, ((0, 0), (0, 0), (0, 0), (0, Cout_p - Cout)))
    w_hwio = w_hwio.astype(compute_dtype)

    inv_std = 1.0 / jnp.sqrt(bn_var.astype(jnp.float32) + eps)
    scale = bn_gamma.astype(jnp.float32) * inv_std
    bias = bn_beta.astype(jnp.float32) - bn_mean.astype(jnp.float32) * scale
    scale = jnp.pad(scale, (0, Cout_p - Cout)).reshape(1, Cout_p)
    bias = jnp.pad(bias, (0, Cout_p - Cout)).reshape(1, Cout_p)

    kernel = functools.partial(
        _conv_bn_kernel,
        KH=KH, KW=KW, TH=TH, Wo=Wo, Cin=Cin, stride=stride, dilation=dilation)

    out_nhwc = pl.pallas_call(
        kernel,
        out_shape=jax.ShapeDtypeStruct((N, Ho, Wo, Cout_p), x_nchw.dtype),
        grid_spec=pltpu.PrefetchScalarGridSpec(
            num_scalar_prefetch=0,
            grid=(N, n_bands),                 # N outer so the image DMA is reused
            in_specs=[
                # Full padded image per batch; block index is constant across the
                # band axis so it is DMA'd once per batch.
                pl.BlockSpec((None, Hp, Wp, Cin), lambda n, b: (n, 0, 0, 0)),
                pl.BlockSpec((KH, KW, Cin, Cout_p), lambda n, b: (0, 0, 0, 0)),
                pl.BlockSpec((1, Cout_p), lambda n, b: (0, 0)),
                pl.BlockSpec((1, Cout_p), lambda n, b: (0, 0)),
            ],
            out_specs=pl.BlockSpec((None, TH, Wo, Cout_p), lambda n, b: (n, b, 0, 0)),
            scratch_shapes=[pltpu.VMEM((TH * Wo, Cout_p), jnp.float32)],
        ),
        compiler_params=pltpu.CompilerParams(
            dimension_semantics=("parallel", "parallel")),
    )(x_pad, w_hwio, scale, bias)

    return jnp.transpose(out_nhwc[..., :Cout], (0, 3, 1, 2))   # back to NCHW


def _reference(x_nchw, weight_oihw, bn_gamma, bn_beta, bn_mean, bn_var,
               *, stride, padding, dilation, eps=1e-5):
    y = lax.conv_general_dilated(
        x_nchw.astype(jnp.float32), weight_oihw.astype(jnp.float32),
        window_strides=(stride, stride),
        padding=[(padding, padding), (padding, padding)],
        rhs_dilation=(dilation, dilation),
        dimension_numbers=("NCHW", "OIHW", "NCHW"),
    )
    inv_std = 1.0 / jnp.sqrt(bn_var + eps)
    scale = (bn_gamma * inv_std).reshape(1, -1, 1, 1)
    bias = (bn_beta - bn_mean * bn_gamma * inv_std).reshape(1, -1, 1, 1)
    return y * scale + bias


if __name__ == "__main__":
    # Small shapes consistent with BasicConv2d(in_planes=4, out_planes=8,
    # kernel_size=3, stride=1, padding=1, dilation=1).
    N, Cin, H, W = 2, 4, 16, 16
    Cout, KH, KW = 8, 3, 3
    stride, padding, dilation = 1, 1, 1

    key = jax.random.PRNGKey(0)
    kx, kw, kg, kb, km, kv = jax.random.split(key, 6)

    x = jax.random.normal(kx, (N, Cin, H, W), dtype=jnp.float32)
    weight = jax.random.normal(kw, (Cout, Cin, KH, KW), dtype=jnp.float32) * 0.1
    gamma = 1.0 + 0.1 * jax.random.normal(kg, (Cout,), dtype=jnp.float32)
    beta = 0.1 * jax.random.normal(kb, (Cout,), dtype=jnp.float32)
    running_mean = 0.1 * jax.random.normal(km, (Cout,), dtype=jnp.float32)
    running_var = 1.0 + 0.1 * jax.random.uniform(kv, (Cout,), dtype=jnp.float32)

    ref = _reference(x, weight, gamma, beta, running_mean, running_var,
                     stride=stride, padding=padding, dilation=dilation)

    # Exact-math check: f32 MXU operands.
    out_f32 = basic_conv2d(x, weight, gamma, beta, running_mean, running_var,
                           stride=stride, padding=padding, dilation=dilation,
                           compute_dtype=jnp.float32)
    out_f32 = jax.block_until_ready(out_f32)
    np.testing.assert_allclose(np.asarray(out_f32), np.asarray(ref),
                               rtol=1e-4, atol=1e-4)

    # Fast path: bf16 MXU operands (f32 accumulate + f32 BN epilogue).
    out_bf16 = basic_conv2d(x, weight, gamma, beta, running_mean, running_var,
                            stride=stride, padding=padding, dilation=dilation,
                            compute_dtype=jnp.bfloat16)
    out_bf16 = jax.block_until_ready(out_bf16)
    np.testing.assert_allclose(np.asarray(out_bf16), np.asarray(ref),
                               rtol=5e-2, atol=5e-2)

    print("KERNEL_OK")
</pallas_src>

<mosaic_0001>
module attributes {stable_mosaic.version = 11 : i64} {
  func.func @_conv_bn_kernel(%arg0: i32, %arg1: i32, %arg2: memref<1x18x18x4xf32, #tpu.memory_space<vmem>>, %arg3: memref<3x3x4x128xf32, #tpu.memory_space<vmem>>, %arg4: memref<1x128xf32, #tpu.memory_space<vmem>>, %arg5: memref<1x128xf32, #tpu.memory_space<vmem>>, %arg6: memref<1x8x16x128xf32, #tpu.memory_space<vmem>>, %arg7: memref<128x128xf32, #tpu.memory_space<vmem>>) attributes {dimension_semantics = [#tpu.dimension_semantics<parallel>, #tpu.dimension_semantics<parallel>], iteration_bounds = array<i64: 2, 2>, scalar_prefetch = 0 : i64, scratch_operands = 1 : i64, tpu.core_type = #tpu.core_type<tc>, window_params = [{transform_indices = @transform_0, window_bounds = array<i64: 1, 18, 18, 4>}, {pipeline_mode = #tpu.pipeline_mode<synchronous>, transform_indices = @transform_1, window_bounds = array<i64: 3, 3, 4, 128>}, {pipeline_mode = #tpu.pipeline_mode<synchronous>, transform_indices = @transform_2, window_bounds = array<i64: 1, 128>}, {pipeline_mode = #tpu.pipeline_mode<synchronous>, transform_indices = @transform_3, window_bounds = array<i64: 1, 128>}, {transform_indices = @transform_4, window_bounds = array<i64: 1, 8, 16, 128>}]} {
    %c8_i32 = arith.constant 8 : i32
    %0 = arith.muli %arg1, %c8_i32 : i32
    %c0_i32 = arith.constant 0 : i32
    %1 = arith.addi %0, %c0_i32 : i32
    %c0 = arith.constant 0 : index
    %2 = arith.index_cast %1 : i32 to index
    %c0_0 = arith.constant 0 : index
    %c0_1 = arith.constant 0 : index
    %3 = vector.load %arg2[%c0, %2, %c0_0, %c0_1] : memref<1x18x18x4xf32, #tpu.memory_space<vmem>>, vector<1x8x16x4xf32>
    %4 = vector.shape_cast %3 : vector<1x8x16x4xf32> to vector<8x16x4xf32>
    %5 = vector.shape_cast %4 : vector<8x16x4xf32> to vector<128x4xf32>
    %c0_2 = arith.constant 0 : index
    %c0_3 = arith.constant 0 : index
    %c0_4 = arith.constant 0 : index
    %c0_5 = arith.constant 0 : index
    %6 = vector.load %arg3[%c0_2, %c0_3, %c0_4, %c0_5] : memref<3x3x4x128xf32, #tpu.memory_space<vmem>>, vector<1x1x4x128xf32>
    %7 = vector.shape_cast %6 : vector<1x1x4x128xf32> to vector<4x128xf32>
    %cst = arith.constant dense<0.000000e+00> : vector<128x128xf32>
    %8 = tpu.matmul %5, %7, %cst {dimension_numbers = #tpu.dot_dimension_numbers<[1], [0], [0], [1], [0, 0, 1, 1], [], []>} : vector<128x4xf32>, vector<4x128xf32>, vector<128x128xf32> -> vector<128x128xf32>
    %c0_6 = arith.constant 0 : index
    %c0_7 = arith.constant 0 : index
    %9 = vector.load %arg7[%c0_6, %c0_7] : memref<128x128xf32, #tpu.memory_space<vmem>>, vector<128x128xf32>
    tpu.vector_store %arg7[%c0_6, %c0_7], %8 {strides = array<i32>} : memref<128x128xf32, #tpu.memory_space<vmem>>, vector<128x128xf32>,
    %c0_i32_8 = arith.constant 0 : i32
    %10 = arith.addi %0, %c0_i32_8 : i32
    %c0_9 = arith.constant 0 : index
    %11 = arith.index_cast %10 : i32 to index
    %c1 = arith.constant 1 : index
    %c0_10 = arith.constant 0 : index
    %12 = vector.load %arg2[%c0_9, %11, %c1, %c0_10] : memref<1x18x18x4xf32, #tpu.memory_space<vmem>>, vector<1x8x16x4xf32>
    %13 = vector.shape_cast %12 : vector<1x8x16x4xf32> to vector<8x16x4xf32>
    %14 = vector.shape_cast %13 : vector<8x16x4xf32> to vector<128x4xf32>
    %c0_11 = arith.constant 0 : index
    %c1_12 = arith.constant 1 : index
    %c0_13 = arith.constant 0 : index
    %c0_14 = arith.constant 0 : index
    %15 = vector.load %arg3[%c0_11, %c1_12, %c0_13, %c0_14] : memref<3x3x4x128xf32, #tpu.memory_space<vmem>>, vector<1x1x4x128xf32>
    %16 = vector.shape_cast %15 : vector<1x1x4x128xf32> to vector<4x128xf32>
    %cst_15 = arith.constant dense<0.000000e+00> : vector<128x128xf32>
    %17 = tpu.matmul %14, %16, %cst_15 {dimension_numbers = #tpu.dot_dimension_numbers<[1], [0], [0], [1], [0, 0, 1, 1], [], []>} : vector<128x4xf32>, vector<4x128xf32>, vector<128x128xf32> -> vector<128x128xf32>
    %c0_16 = arith.constant 0 : index
    %c0_17 = arith.constant 0 : index
    %18 = vector.load %arg7[%c0_16, %c0_17] : memref<128x128xf32, #tpu.memory_space<vmem>>, vector<128x128xf32>
    %19 = arith.addf %18, %17 : vector<128x128xf32>
    %c0_18 = arith.constant 0 : index
    %c0_19 = arith.constant 0 : index
    %20 = vector.load %arg7[%c0_18, %c0_19] : memref<128x128xf32, #tpu.memory_space<vmem>>, vector<128x128xf32>
    tpu.vector_store %arg7[%c0_18, %c0_19], %19 {strides = array<i32>} : memref<128x128xf32, #tpu.memory_space<vmem>>, vector<128x128xf32>,
    %c0_i32_20 = arith.constant 0 : i32
    %21 = arith.addi %0, %c0_i32_20 : i32
    %c0_21 = arith.constant 0 : index
    %22 = arith.index_cast %21 : i32 to index
    %c2 = arith.constant 2 : index
    %c0_22 = arith.constant 0 : index
    %23 = vector.load %arg2[%c0_21, %22, %c2, %c0_22] : memref<1x18x18x4xf32, #tpu.memory_space<vmem>>, vector<1x8x16x4xf32>
    %24 = vector.shape_cast %23 : vector<1x8x16x4xf32> to vector<8x16x4xf32>
    %25 = vector.shape_cast %24 : vector<8x16x4xf32> to vector<128x4xf32>
    %c0_23 = arith.constant 0 : index
    %c2_24 = arith.constant 2 : index
    %c0_25 = arith.constant 0 : index
    %c0_26 = arith.constant 0 : index
    %26 = vector.load %arg3[%c0_23, %c2_24, %c0_25, %c0_26] : memref<3x3x4x128xf32, #tpu.memory_space<vmem>>, vector<1x1x4x128xf32>
    %27 = vector.shape_cast %26 : vector<1x1x4x128xf32> to vector<4x128xf32>
    %cst_27 = arith.constant dense<0.000000e+00> : vector<128x128xf32>
    %28 = tpu.matmul %25, %27, %cst_27 {dimension_numbers = #tpu.dot_dimension_numbers<[1], [0], [0], [1], [0, 0, 1, 1], [], []>} : vector<128x4xf32>, vector<4x128xf32>, vector<128x128xf32> -> vector<128x128xf32>
    %c0_28 = arith.constant 0 : index
    %c0_29 = arith.constant 0 : index
    %29 = vector.load %arg7[%c0_28, %c0_29] : memref<128x128xf32, #tpu.memory_space<vmem>>, vector<128x128xf32>
    %30 = arith.addf %29, %28 : vector<128x128xf32>
    %c0_30 = arith.constant 0 : index
    %c0_31 = arith.constant 0 : index
    %31 = vector.load %arg7[%c0_30, %c0_31] : memref<128x128xf32, #tpu.memory_space<vmem>>, vector<128x128xf32>
    tpu.vector_store %arg7[%c0_30, %c0_31], %30 {strides = array<i32>} : memref<128x128xf32, #tpu.memory_space<vmem>>, vector<128x128xf32>,
    %c1_i32 = arith.constant 1 : i32
    %32 = arith.addi %0, %c1_i32 : i32
    %c0_32 = arith.constant 0 : index
    %33 = arith.index_cast %32 : i32 to index
    %c0_33 = arith.constant 0 : index
    %c0_34 = arith.constant 0 : index
    %34 = vector.load %arg2[%c0_32, %33, %c0_33, %c0_34] : memref<1x18x18x4xf32, #tpu.memory_space<vmem>>, vector<1x8x16x4xf32>
    %35 = vector.shape_cast %34 : vector<1x8x16x4xf32> to vector<8x16x4xf32>
    %36 = vector.shape_cast %35 : vector<8x16x4xf32> to vector<128x4xf32>
    %c1_35 = arith.constant 1 : index
    %c0_36 = arith.constant 0 : index
    %c0_37 = arith.constant 0 : index
    %c0_38 = arith.constant 0 : index
    %37 = vector.load %arg3[%c1_35, %c0_36, %c0_37, %c0_38] : memref<3x3x4x128xf32, #tpu.memory_space<vmem>>, vector<1x1x4x128xf32>
    %38 = vector.shape_cast %37 : vector<1x1x4x128xf32> to vector<4x128xf32>
    %cst_39 = arith.constant dense<0.000000e+00> : vector<128x128xf32>
    %39 = tpu.matmul %36, %38, %cst_39 {dimension_numbers = #tpu.dot_dimension_numbers<[1], [0], [0], [1], [0, 0, 1, 1], [], []>} : vector<128x4xf32>, vector<4x128xf32>, vector<128x128xf32> -> vector<128x128xf32>
    %c0_40 = arith.constant 0 : index
    %c0_41 = arith.constant 0 : index
    %40 = vector.load %arg7[%c0_40, %c0_41] : memref<128x128xf32, #tpu.memory_space<vmem>>, vector<128x128xf32>
    %41 = arith.addf %40, %39 : vector<128x128xf32>
    %c0_42 = arith.constant 0 : index
    %c0_43 = arith.constant 0 : index
    %42 = vector.load %arg7[%c0_42, %c0_43] : memref<128x128xf32, #tpu.memory_space<vmem>>, vector<128x128xf32>
    tpu.vector_store %arg7[%c0_42, %c0_43], %41 {strides = array<i32>} : memref<128x128xf32, #tpu.memory_space<vmem>>, vector<128x128xf32>,
    %c1_i32_44 = arith.constant 1 : i32
    %43 = arith.addi %0, %c1_i32_44 : i32
    %c0_45 = arith.constant 0 : index
    %44 = arith.index_cast %43 : i32 to index
    %c1_46 = arith.constant 1 : index
    %c0_47 = arith.constant 0 : index
    %45 = vector.load %arg2[%c0_45, %44, %c1_46, %c0_47] : memref<1x18x18x4xf32, #tpu.memory_space<vmem>>, vector<1x8x16x4xf32>
    %46 = vector.shape_cast %45 : vector<1x8x16x4xf32> to vector<8x16x4xf32>
    %47 = vector.shape_cast %46 : vector<8x16x4xf32> to vector<128x4xf32>
    %c1_48 = arith.constant 1 : index
    %c1_49 = arith.constant 1 : index
    %c0_50 = arith.constant 0 : index
    %c0_51 = arith.constant 0 : index
    %48 = vector.load %arg3[%c1_48, %c1_49, %c0_50, %c0_51] : memref<3x3x4x128xf32, #tpu.memory_space<vmem>>, vector<1x1x4x128xf32>
    %49 = vector.shape_cast %48 : vector<1x1x4x128xf32> to vector<4x128xf32>
    %cst_52 = arith.constant dense<0.000000e+00> : vector<128x128xf32>
    %50 = tpu.matmul %47, %49, %cst_52 {dimension_numbers = #tpu.dot_dimension_numbers<[1], [0], [0], [1], [0, 0, 1, 1], [], []>} : vector<128x4xf32>, vector<4x128xf32>, vector<128x128xf32> -> vector<128x128xf32>
    %c0_53 = arith.constant 0 : index
    %c0_54 = arith.constant 0 : index
    %51 = vector.load %arg7[%c0_53, %c0_54] : memref<128x128xf32, #tpu.memory_space<vmem>>, vector<128x128xf32>
    %52 = arith.addf %51, %50 : vector<128x128xf32>
    %c0_55 = arith.constant 0 : index
    %c0_56 = arith.constant 0 : index
    %53 = vector.load %arg7[%c0_55, %c0_56] : memref<128x128xf32, #tpu.memory_space<vmem>>, vector<128x128xf32>
    tpu.vector_store %arg7[%c0_55, %c0_56], %52 {strides = array<i32>} : memref<128x128xf32, #tpu.memory_space<vmem>>, vector<128x128xf32>,
    %c1_i32_57 = arith.constant 1 : i32
    %54 = arith.addi %0, %c1_i32_57 : i32
    %c0_58 = arith.constant 0 : index
    %55 = arith.index_cast %54 : i32 to index
    %c2_59 = arith.constant 2 : index
    %c0_60 = arith.constant 0 : index
    %56 = vector.load %arg2[%c0_58, %55, %c2_59, %c0_60] : memref<1x18x18x4xf32, #tpu.memory_space<vmem>>, vector<1x8x16x4xf32>
    %57 = vector.shape_cast %56 : vector<1x8x16x4xf32> to vector<8x16x4xf32>
    %58 = vector.shape_cast %57 : vector<8x16x4xf32> to vector<128x4xf32>
    %c1_61 = arith.constant 1 : index
    %c2_62 = arith.constant 2 : index
    %c0_63 = arith.constant 0 : index
    %c0_64 = arith.constant 0 : index
    %59 = vector.load %arg3[%c1_61, %c2_62, %c0_63, %c0_64] : memref<3x3x4x128xf32, #tpu.memory_space<vmem>>, vector<1x1x4x128xf32>
    %60 = vector.shape_cast %59 : vector<1x1x4x128xf32> to vector<4x128xf32>
    %cst_65 = arith.constant dense<0.000000e+00> : vector<128x128xf32>
    %61 = tpu.matmul %58, %60, %cst_65 {dimension_numbers = #tpu.dot_dimension_numbers<[1], [0], [0], [1], [0, 0, 1, 1], [], []>} : vector<128x4xf32>, vector<4x128xf32>, vector<128x128xf32> -> vector<128x128xf32>
    %c0_66 = arith.constant 0 : index
    %c0_67 = arith.constant 0 : index
    %62 = vector.load %arg7[%c0_66, %c0_67] : memref<128x128xf32, #tpu.memory_space<vmem>>, vector<128x128xf32>
    %63 = arith.addf %62, %61 : vector<128x128xf32>
    %c0_68 = arith.constant 0 : index
    %c0_69 = arith.constant 0 : index
    %64 = vector.load %arg7[%c0_68, %c0_69] : memref<128x128xf32, #tpu.memory_space<vmem>>, vector<128x128xf32>
    tpu.vector_store %arg7[%c0_68, %c0_69], %63 {strides = array<i32>} : memref<128x128xf32, #tpu.memory_space<vmem>>, vector<128x128xf32>,
    %c2_i32 = arith.constant 2 : i32
    %65 = arith.addi %0, %c2_i32 : i32
    %c0_70 = arith.constant 0 : index
    %66 = arith.index_cast %65 : i32 to index
    %c0_71 = arith.constant 0 : index
    %c0_72 = arith.constant 0 : index
    %67 = vector.load %arg2[%c0_70, %66, %c0_71, %c0_72] : memref<1x18x18x4xf32, #tpu.memory_space<vmem>>, vector<1x8x16x4xf32>
    %68 = vector.shape_cast %67 : vector<1x8x16x4xf32> to vector<8x16x4xf32>
    %69 = vector.shape_cast %68 : vector<8x16x4xf32> to vector<128x4xf32>
    %c2_73 = arith.constant 2 : index
    %c0_74 = arith.constant 0 : index
    %c0_75 = arith.constant 0 : index
    %c0_76 = arith.constant 0 : index
    %70 = vector.load %arg3[%c2_73, %c0_74, %c0_75, %c0_76] : memref<3x3x4x128xf32, #tpu.memory_space<vmem>>, vector<1x1x4x128xf32>
    %71 = vector.shape_cast %70 : vector<1x1x4x128xf32> to vector<4x128xf32>
    %cst_77 = arith.constant dense<0.000000e+00> : vector<128x128xf32>
    %72 = tpu.matmul %69, %71, %cst_77 {dimension_numbers = #tpu.dot_dimension_numbers<[1], [0], [0], [1], [0, 0, 1, 1], [], []>} : vector<128x4xf32>, vector<4x128xf32>, vector<128x128xf32> -> vector<128x128xf32>
    %c0_78 = arith.constant 0 : index
    %c0_79 = arith.constant 0 : index
    %73 = vector.load %arg7[%c0_78, %c0_79] : memref<128x128xf32, #tpu.memory_space<vmem>>, vector<128x128xf32>
    %74 = arith.addf %73, %72 : vector<128x128xf32>
    %c0_80 = arith.constant 0 : index
    %c0_81 = arith.constant 0 : index
    %75 = vector.load %arg7[%c0_80, %c0_81] : memref<128x128xf32, #tpu.memory_space<vmem>>, vector<128x128xf32>
    tpu.vector_store %arg7[%c0_80, %c0_81], %74 {strides = array<i32>} : memref<128x128xf32, #tpu.memory_space<vmem>>, vector<128x128xf32>,
    %c2_i32_82 = arith.constant 2 : i32
    %76 = arith.addi %0, %c2_i32_82 : i32
    %c0_83 = arith.constant 0 : index
    %77 = arith.index_cast %76 : i32 to index
    %c1_84 = arith.constant 1 : index
    %c0_85 = arith.constant 0 : index
    %78 = vector.load %arg2[%c0_83, %77, %c1_84, %c0_85] : memref<1x18x18x4xf32, #tpu.memory_space<vmem>>, vector<1x8x16x4xf32>
    %79 = vector.shape_cast %78 : vector<1x8x16x4xf32> to vector<8x16x4xf32>
    %80 = vector.shape_cast %79 : vector<8x16x4xf32> to vector<128x4xf32>
    %c2_86 = arith.constant 2 : index
    %c1_87 = arith.constant 1 : index
    %c0_88 = arith.constant 0 : index
    %c0_89 = arith.constant 0 : index
    %81 = vector.load %arg3[%c2_86, %c1_87, %c0_88, %c0_89] : memref<3x3x4x128xf32, #tpu.memory_space<vmem>>, vector<1x1x4x128xf32>
    %82 = vector.shape_cast %81 : vector<1x1x4x128xf32> to vector<4x128xf32>
    %cst_90 = arith.constant dense<0.000000e+00> : vector<128x128xf32>
    %83 = tpu.matmul %80, %82, %cst_90 {dimension_numbers = #tpu.dot_dimension_numbers<[1], [0], [0], [1], [0, 0, 1, 1], [], []>} : vector<128x4xf32>, vector<4x128xf32>, vector<128x128xf32> -> vector<128x128xf32>
    %c0_91 = arith.constant 0 : index
    %c0_92 = arith.constant 0 : index
    %84 = vector.load %arg7[%c0_91, %c0_92] : memref<128x128xf32, #tpu.memory_space<vmem>>, vector<128x128xf32>
    %85 = arith.addf %84, %83 : vector<128x128xf32>
    %c0_93 = arith.constant 0 : index
    %c0_94 = arith.constant 0 : index
    %86 = vector.load %arg7[%c0_93, %c0_94] : memref<128x128xf32, #tpu.memory_space<vmem>>, vector<128x128xf32>
    tpu.vector_store %arg7[%c0_93, %c0_94], %85 {strides = array<i32>} : memref<128x128xf32, #tpu.memory_space<vmem>>, vector<128x128xf32>,
    %c2_i32_95 = arith.constant 2 : i32
    %87 = arith.addi %0, %c2_i32_95 : i32
    %c0_96 = arith.constant 0 : index
    %88 = arith.index_cast %87 : i32 to index
    %c2_97 = arith.constant 2 : index
    %c0_98 = arith.constant 0 : index
    %89 = vector.load %arg2[%c0_96, %88, %c2_97, %c0_98] : memref<1x18x18x4xf32, #tpu.memory_space<vmem>>, vector<1x8x16x4xf32>
    %90 = vector.shape_cast %89 : vector<1x8x16x4xf32> to vector<8x16x4xf32>
    %91 = vector.shape_cast %90 : vector<8x16x4xf32> to vector<128x4xf32>
    %c2_99 = arith.constant 2 : index
    %c2_100 = arith.constant 2 : index
    %c0_101 = arith.constant 0 : index
    %c0_102 = arith.constant 0 : index
    %92 = vector.load %arg3[%c2_99, %c2_100, %c0_101, %c0_102] : memref<3x3x4x128xf32, #tpu.memory_space<vmem>>, vector<1x1x4x128xf32>
    %93 = vector.shape_cast %92 : vector<1x1x4x128xf32> to vector<4x128xf32>
    %cst_103 = arith.constant dense<0.000000e+00> : vector<128x128xf32>
    %94 = tpu.matmul %91, %93, %cst_103 {dimension_numbers = #tpu.dot_dimension_numbers<[1], [0], [0], [1], [0, 0, 1, 1], [], []>} : vector<128x4xf32>, vector<4x128xf32>, vector<128x128xf32> -> vector<128x128xf32>
    %c0_104 = arith.constant 0 : index
    %c0_105 = arith.constant 0 : index
    %95 = vector.load %arg7[%c0_104, %c0_105] : memref<128x128xf32, #tpu.memory_space<vmem>>, vector<128x128xf32>
    %96 = arith.addf %95, %94 : vector<128x128xf32>
    %c0_106 = arith.constant 0 : index
    %c0_107 = arith.constant 0 : index
    %97 = vector.load %arg7[%c0_106, %c0_107] : memref<128x128xf32, #tpu.memory_space<vmem>>, vector<128x128xf32>
    tpu.vector_store %arg7[%c0_106, %c0_107], %96 {strides = array<i32>} : memref<128x128xf32, #tpu.memory_space<vmem>>, vector<128x128xf32>,
    %c0_108 = arith.constant 0 : index
    %c0_109 = arith.constant 0 : index
    %98 = vector.load %arg7[%c0_108, %c0_109] : memref<128x128xf32, #tpu.memory_space<vmem>>, vector<128x128xf32>
    %c0_110 = arith.constant 0 : index
    %c0_111 = arith.constant 0 : index
    %99 = vector.load %arg4[%c0_110, %c0_111] : memref<1x128xf32, #tpu.memory_space<vmem>>, vector<1x128xf32>
    %100 = vector.broadcast %99 : vector<1x128xf32> to vector<128x128xf32>
    %101 = arith.mulf %98, %100 : vector<128x128xf32>
    %c0_112 = arith.constant 0 : index
    %c0_113 = arith.constant 0 : index
    %102 = vector.load %arg5[%c0_112, %c0_113] : memref<1x128xf32, #tpu.memory_space<vmem>>, vector<1x128xf32>
    %103 = vector.broadcast %102 : vector<1x128xf32> to vector<128x128xf32>
    %104 = arith.addf %101, %103 : vector<128x128xf32>
    %105 = vector.shape_cast %104 : vector<128x128xf32> to vector<8x16x128xf32>
    %c0_114 = arith.constant 0 : index
    %c0_115 = arith.constant 0 : index
    %c0_116 = arith.constant 0 : index
    %c0_117 = arith.constant 0 : index
    %106 = vector.load %arg6[%c0_114, %c0_115, %c0_116, %c0_117] : memref<1x8x16x128xf32, #tpu.memory_space<vmem>>, vector<1x8x16x128xf32>
    %107 = vector.shape_cast %106 : vector<1x8x16x128xf32> to vector<8x16x128xf32>
    %108 = vector.shape_cast %105 : vector<8x16x128xf32> to vector<1x8x16x128xf32>
    tpu.vector_store %arg6[%c0_114, %c0_115, %c0_116, %c0_117], %108 {strides = array<i32>} : memref<1x8x16x128xf32, #tpu.memory_space<vmem>>, vector<1x8x16x128xf32>,
    return
  }
  func.func @transform_0(%arg0: i32, %arg1: i32) -> (i32, i32, i32, i32) {
    %c0_i32 = arith.constant 0 : i32
    %c0_i32_0 = arith.constant 0 : i32
    %c0_i32_1 = arith.constant 0 : i32
    %c0_i32_2 = arith.constant 0 : i32
    return %arg0, %c0_i32, %c0_i32_0, %c0_i32_1 : i32, i32, i32, i32
  }
  func.func @transform_1(%arg0: i32, %arg1: i32) -> (i32, i32, i32, i32) {
    %c0_i32 = arith.constant 0 : i32
    %c0_i32_0 = arith.constant 0 : i32
    %c0_i32_1 = arith.constant 0 : i32
    %c0_i32_2 = arith.constant 0 : i32
    %c0_i32_3 = arith.constant 0 : i32
    return %c0_i32, %c0_i32_0, %c0_i32_1, %c0_i32_2 : i32, i32, i32, i32
  }
  func.func @transform_2(%arg0: i32, %arg1: i32) -> (i32, i32) {
    %c0_i32 = arith.constant 0 : i32
    %c0_i32_0 = arith.constant 0 : i32
    %c0_i32_1 = arith.constant 0 : i32
    return %c0_i32, %c0_i32_0 : i32, i32
  }
  func.func @transform_3(%arg0: i32, %arg1: i32) -> (i32, i32) {
    %c0_i32 = arith.constant 0 : i32
    %c0_i32_0 = arith.constant 0 : i32
    %c0_i32_1 = arith.constant 0 : i32
    return %c0_i32, %c0_i32_0 : i32, i32
  }
  func.func @transform_4(%arg0: i32, %arg1: i32) -> (i32, i32, i32, i32) {
    %c0_i32 = arith.constant 0 : i32
    %c0_i32_0 = arith.constant 0 : i32
    %c0_i32_1 = arith.constant 0 : i32
    return %arg0, %arg1, %c0_i32, %c0_i32_0 : i32, i32, i32, i32
  }
}

</mosaic_0001>

<bundles_post_ra>
// kernel: tpu_custom_call.1
= control target key start
LH: loop header
LB: loop body
LE: loop exit
PB: predicated region body
PF: predicated region fallthrough
CT: control target
= control target key end

     0   :  { %9 = vsyncpa [#allocation4], 0  ;;  %s3203_s0 = inlined_call_operand.vmem [shape: f32[2,18,18,4], index: 0, kind: input, shape index: {}]   ;;  %s3204_s1 = inlined_call_operand.vmem [shape: f32[3,3,4,128], index: 1, kind: input, shape index: {}]   ;;  %s3205_s2 = inlined_call_operand.vmem [shape: f32[1,128], index: 2, kind: input, shape index: {}]   ;;  %s3206_s3 = inlined_call_operand.vmem [shape: f32[1,128], index: 3, kind: input, shape index: {}]   ;;  %s3207_s4 = inlined_call_operand.hbm [shape: f32[2,16,16,128], index: 4, kind: output, shape index: {}]  }
   0x1   :  { %11 = vsyncpa [#allocation4 + $0x1], 0  ;;  %s2484_s15 = smov 0   ;;  %s2486_s16 = smov 0  }
   0x2   :  { %s2488_s17 = smov 0   ;;  %s2490_s18 = smov 0  }
   0x3   :  { %s2492_s19 = smov 0   ;;  %s2494_s20 = smov 0  }
   0x4   :  { %s2496_s21 = smov 0   ;;  %s2498_s22 = smov 0  }
   0x5 LB: > { %s2004_s23 = sadd.s32 4294967295, %s2455_s22   ;;  %s2005_s24 = sadd.s32 4294967294, %s2455_s22   ;;  %s2455_s22 = sphi %s2498_s22, %s17_s22   ;;  %s2451_s21 = sphi %s2496_s21, %s3225_s21   ;;  %s2447_s20 = sphi %s2494_s20, %s3224_s20   ;;  %s2443_s19 = sphi %s2492_s19, %s3223_s19   ;;  %s2439_s18 = sphi %s2490_s18, %s3222_s18   ;;  %s2435_s17 = sphi %s2488_s17, %s3221_s17   ;;  %s2431_s16 = sphi %s2486_s16, %s3220_s16   ;;  %s2427_s15 = sphi %s2484_s15, %s3219_s15  }
   0x6   : > { %s26_s25 = sadd.s32 1, %s2447_s20  ;;  %s29_s26 = sadd.s32 1, %s2451_s21 }
   0x7   : > { %p27_p0 = scmp.ge.s32.totalorder %s26_s25, 2  ;;  %p137_p1 = scmp.ne.s32.totalorder %s2435_s17, %s2431_s16 }
   0x8   : > { %p138_p2 = scmp.eq.s32.totalorder %s2004_s23, 3  ;;  %p143_p5 = scmp.ne.s32.totalorder %s2431_s16, %s2427_s15 }
   0x9   : > { %s3227_s25 = smov (%p27_p0, %s26_s25), 0  ;;  %s3229_s26 = smov (!%p27_p0, %s29_s26), %s2451_s21 }
   0xa   : > { %s123_s27 = ssub.s32 %s2447_s20, %s3227_s25  ;;  %p2535_p3 = por %p138_p2, %p137_p1 }
   0xb   : > { %p31_p4 = scmp.ge.s32.totalorder %s3229_s26, 2  ;;  %p144_p6 = scmp.eq.s32.totalorder %s2005_s24, 3 }
   0xc   : > { %p2008_p7 = scmp.ge.s32.totalorder %s2455_s22, 1  ;;  %p179_p9 = scmp.lt.s32.totalorder %s2455_s22, 5 }
   0xd   : > { %s3231_s26 = smov (%p31_p4, %s3229_s26), 0  ;;  %p2544_p8 = por %p144_p6, %p143_p5 }
   0xe   : > { %s122_s30 = ssub.s32 %s2451_s21, %s3231_s26  ;;  %s127_s5 = sadd.s32 1, %s2435_s17 }
   0xf   : > { %s124_s6 = sor.u32 %s123_s27, %s122_s30  ;;  %p180_p10 = pnand %p2008_p7, %p179_p9 }
  0x10   : > { %p125_p11 = scmp.eq.s32.totalorder %s124_s6, 0 }
  0x11   : > { %183 = sbr.rel (%p180_p10) target bundleno = 457 (0x1c9), region = 36 }
  0x12   : > { %s2553_s7 = scalar_select %p125_p11, %s2435_s17, %s127_s5  }
  0x16   : > { %v230_v0 = vld [vmem:[%s3204_s1] sm:$0xf]  ;;  %vm280_vm0 = vcmask 1043456   ;;  %p205_p12 = scmp.lt.s32.totalorder %s2443_s19, 1  ;;  %v2048_v1 = vld [vmem:[%s3204_s1 + $0x8] sm:$0xf] }
  0x17   : > { %2282 = vmatpush.msk.msra.mxu1 %vm280_vm0, %v230_v0  ;;  %2283 = vmatpush.msk.msra.mxu2 %vm280_vm0, %v230_v0  ;;  %v2084_v2 = vld [vmem:[%s3204_s1 + $0xc] sm:$0xf]  ;;  %v2030_v3 = vld [vmem:[%s3204_s1 + $0x4] sm:$0xf]  ;;  %v2118_v4 = vld [vmem:[%s3204_s1 + $0x10] sm:$0xf] }
  0x18   : > { %s206_s24 = scalar_select %p205_p12, %s2443_s19, 1  ;;  %2284 = vmatpush.msk.msra.mxu3 %vm280_vm0, %v230_v0  ;;  %2013 = vmatpush.msk.msra.mxu0 %vm280_vm0, %v230_v0  ;;  %vm231_vm1 = vcmask 31744   ;;  %v2188_v10 = vld [vmem:[%s3204_s1 + $0x18] sm:$0xf]  ;;  %v2222_v12 = vld [vmem:[%s3204_s1 + $0x1c] sm:$0xf] }
  0x19   : > { %2049 = vmatpush.msk.msrb.mxu2 %vm280_vm0, %v2048_v1  ;;  %s2012_s5 = smul.u32 192, %s2439_s18  ;;  %2031 = vmatpush.msk.msrb.mxu1 %vm280_vm0, %v2030_v3  ;;  %v2152_v13 = vld [vmem:[%s3204_s1 + $0x14] sm:$0xf]  ;;  %v2256_v16 = vld [vmem:[%s3204_s1 + $0x20] sm:$0xf]  ;;  %s2281_s14 = sshll.u32 %s2439_s18, 4 }
  0x1a   : > { %2085 = vmatpush.msk.msrb.mxu3 %vm280_vm0, %v2084_v2  ;;  %s2285_s6 = smul.u32 432, %s206_s24  ;;  %2119 = vmatpush.msk.msrb.mxu0 %vm280_vm0, %v2118_v4  ;;  %s2277_s23 = sshll.u32 %s2443_s19, 5 }
  0x1b   : > { %s1912_s24 = sadd.s32 %s2281_s14, %s2277_s23  ;;  %s2381_s23 = scalar_lea.hbm %s3207_s4, 512 }
  0x1c   : > { %s209_s10 = scalar_lea.vmem %s3203_s0, %s2285_s6  ;;  %s202_s6 = sand.u32 1, %s2431_s16  }
  0x1d   : > { %s2584_s11 = scalar_lea.vmem %s209_s10, %s2012_s5  ;;  %s2009_s10 = sshll.u32 %s202_s6, 7 }
  0x1e   : > { %v2587_v5 = vld [vmem:[%s2584_s11 + $0x30] sm:$0xff]  ;;  %v2590_v6 = vld [vmem:[%s2584_s11 + $0x60] sm:$0xff]  ;;  %v2604_v9 = vld [vmem:[%s2584_s11 + $0x38] sm:$0xff]  ;;  %s3095_s13 = scalar_lea.vmem [#allocation3], %s2009_s10  ;;  %s2278_s27 = sshll.u32 %s1912_s24, 3 }
  0x1f   : > { %v2593_v7 = vld [vmem:[%s2584_s11 + $0x90] sm:$0xff]  ;;  %2018 = vmatmul.msk.f32.vlgmr.msra.gmra.mxu1 %vm231_vm1, %v2587_v5  ;;  %2022 = vmatmul.msk.f32.vlgmr.msra.gmra.mxu2 %vm231_vm1, %v2590_v6  ;;  %v214_v8 = vld [vmem:[%s2584_s11] sm:$0xff]  ;;  %v2610_v11 = vld [vmem:[%s2584_s11 + $0x68] sm:$0xff]  ;;  %s1914_s30 = scalar_lea.hbm %s3207_s4, %s2278_s27  ;;  %s1915_s5 = sshll.u32 %s3095_s13, 4  ;;  %s1916_s5 = int_to_ptr.vmem [resolvable:$true] %s1915_s5 }
  0x20   : > { %2026 = vmatmul.msk.f32.vlgmr.msra.gmra.mxu3 %vm231_vm1, %v2593_v7  ;;  %2014 = vmatmul.msk.f32.vlgmr.msra.gmra.mxu0 %vm231_vm1, %v214_v8  ;;  %v2620_v14 = vld [vmem:[%s2584_s11 + $0x98] sm:$0xff]  ;;  %v215_v15 = vld [vmem:[%s2584_s11 + $0x8] sm:$0xff]  ;;  %v2654_v21 = vld [vmem:[%s2584_s11 + $0x50] sm:$0xff]  ;;  %s1917_s8 = sshll.u32 %s1914_s30, 4  ;;  %s1900_s9 = scalar_lea.sflag [#allocation4], %s202_s6  ;;  %s1918_s8 = int_to_ptr.hbm [resolvable:$true] %s1917_s8 }
  0x21   : > { %2189 = vmatpush.msk.msra.mxu2 %vm280_vm0, %v2188_v10  ;;  %2223 = vmatpush.msk.msra.mxu3 %vm280_vm0, %v2222_v12  ;;  %v2637_v17 = vld [vmem:[%s2584_s11 + $0x48] sm:$0xff]  ;;  %v2640_v18 = vld [vmem:[%s2584_s11 + $0x78] sm:$0xff]  ;;  %v2657_v22 = vld [vmem:[%s2584_s11 + $0x80] sm:$0xff]  ;;  %s2375_s10 = sshra.s32 %s1918_s8, 4  ;;  %s2376_s10 = int_to_ptr.hbm [resolvable:$true] %s2375_s10 }
  0x22   : > { %2153 = vmatpush.msk.msra.mxu1 %vm280_vm0, %v2152_v13  ;;  %2257 = vmatpush.msk.msra.mxu0 %vm280_vm0, %v2256_v16  ;;  %v2643_v19 = vld [vmem:[%s2584_s11 + $0xa8] sm:$0xff]  ;;  %v216_v20 = vld [vmem:[%s2584_s11 + $0x18] sm:$0xff]  ;;  %v2660_v23 = vld [vmem:[%s2584_s11 + $0xb0] sm:$0xff]  ;;  %p2382_p2 = scmp.lt.s32.totalorder %s2376_s10, %s3207_s4 }
  0x23   : > { %v217_v24 = vld [vmem:[%s2584_s11 + $0x20] sm:$0xff]  ;;  %v366_v28 = vld [vmem:[%s2584_s11 + $0x9] sm:$0xff]  ;;  %v2688_v32 = vld [vmem:[%s2584_s11 + $0x31] sm:$0xff] }
  0x24   : > { %v365_v25 = vld [vmem:[%s2584_s11 + $0x1] sm:$0xff]  ;;  %v2102_v27 = vld [vmem:[%s2584_s11 + $0x19] sm:$0xff]  ;;  %v548_v29 = vld [vmem:[%s2584_s11 + $0xa] sm:$0xff] }
  0x25   : > { %v547_v26 = vld [vmem:[%s2584_s11 + $0x2] sm:$0xff]  ;;  %v2685_v31 = vld [vmem:[%s2584_s11 + $0x1a] sm:$0xff]  ;;  %v2711_v35 = vld [vmem:[%s2584_s11 + $0x32] sm:$0xff] }
  0x26   : > { %v2103_v30 = vld [vmem:[%s2584_s11 + $0x21] sm:$0xff]  ;;  %v2701_v34 = vld [vmem:[%s2584_s11 + $0x39] sm:$0xff]  ;;  %v2714_v36 = vld [vmem:[%s2584_s11 + $0x49] sm:$0xff] }
  0x27   : > { %2019 = vmatmul.msk.f32.gmra.mxu1 %vm231_vm1, %v2604_v9  ;;  %2023 = vmatmul.msk.f32.gmra.mxu2 %vm231_vm1, %v2610_v11  ;;  %v2698_v33 = vld [vmem:[%s2584_s11 + $0x22] sm:$0xff]  ;;  %v2725_v37 = vld [vmem:[%s2584_s11 + $0x3a] sm:$0xff]  ;;  %v2728_v38 = vld [vmem:[%s2584_s11 + $0x51] sm:$0xff] }
  0x28   : > { %2027 = vmatmul.msk.f32.gmra.mxu3 %vm231_vm1, %v2620_v14  ;;  %2015 = vmatmul.msk.f32.gmra.mxu0 %vm231_vm1, %v215_v15  ;;  %v2739_v39 = vld [vmem:[%s2584_s11 + $0x4a] sm:$0xff]  ;;  %v2742_v40 = vld [vmem:[%s2584_s11 + $0x61] sm:$0xff]  ;;  %v2753_v41 = vld [vmem:[%s2584_s11 + $0x52] sm:$0xff] }
  0x29   : > { %v2756_v42 = vld [vmem:[%s2584_s11 + $0x69] sm:$0xff]  ;;  %v2770_v44 = vld [vmem:[%s2584_s11 + $0x79] sm:$0xff]  ;;  %v2784_v46 = vld [vmem:[%s2584_s11 + $0x81] sm:$0xff] }
  0x2a   : > { %v2767_v43 = vld [vmem:[%s2584_s11 + $0x62] sm:$0xff]  ;;  %v2781_v45 = vld [vmem:[%s2584_s11 + $0x6a] sm:$0xff]  ;;  %v2795_v47 = vld [vmem:[%s2584_s11 + $0x7a] sm:$0xff] }
  0x2b   : > { %v2798_v48 = vld [vmem:[%s2584_s11 + $0x91] sm:$0xff]  ;;  %v2809_v49 = vld [vmem:[%s2584_s11 + $0x82] sm:$0xff]  ;;  %v2812_v50 = vld [vmem:[%s2584_s11 + $0x99] sm:$0xff] }
  0x2c   : > { %v2825_v52 = vld [vmem:[%s2584_s11 + $0x92] sm:$0xff]  ;;  %v2828_v54 = vld [vmem:[%s2584_s11 + $0xa9] sm:$0xff]  ;;  %v2845_v58 = vld [vmem:[%s2584_s11 + $0x9a] sm:$0xff] }
  0x2d   : > { %v2848_v60 = vld [vmem:[%s2584_s11 + $0xb1] sm:$0xff]  ;;  %v2868_v1 = vld [vmem:[%s2584_s11 + $0xc0] sm:$0xff]  ;;  %v2891_v13 = vld [vmem:[%s2584_s11 + $0xc8] sm:$0xff] }
  0x2e   : > { %v2865_v0 = vld [vmem:[%s2584_s11 + $0xaa] sm:$0xff]  ;;  %v2871_v3 = vld [vmem:[%s2584_s11 + $0xc1] sm:$0xff]  ;;  %v2888_v12 = vld [vmem:[%s2584_s11 + $0xb2] sm:$0xff] }
  0x2f   : > { %2020 = vmatmul.msk.f32.gmra.mxu1 %vm231_vm1, %v2637_v17  ;;  %2024 = vmatmul.msk.f32.gmra.mxu2 %vm231_vm1, %v2640_v18  ;;  %v2894_v16 = vld [vmem:[%s2584_s11 + $0xc9] sm:$0xff] }
  0x30   : > { %2028 = vmatmul.msk.f32.gmra.mxu3 %vm231_vm1, %v2643_v19  ;;  %2016 = vmatmul.msk.f32.gmra.mxu0 %vm231_vm1, %v216_v20  ;;  %3213 = vst [vmem:[#allocation8_spill] sm:$0xff] %v2894_v16 }
  0x37   : > { %2021 = vmatmul.msk.f32.gmra.mxu1 %vm231_vm1, %v2654_v21  ;;  %2025 = vmatmul.msk.f32.gmra.mxu2 %vm231_vm1, %v2657_v22 }
  0x38   : > { %2029 = vmatmul.msk.f32.gmra.mxu3 %vm231_vm1, %v2660_v23  ;;  %2017 = vmatmul.msk.f32.gmra.mxu0 %vm231_vm1, %v217_v24 }
  0x3f   : > { %2032 = vmatmul.msk.f32.vlgmr.msrb.gmra.mxu1 %vm231_vm1, %v365_v25  ;;  %2050 = vmatmul.msk.f32.vlgmr.msrb.gmra.mxu2 %vm231_vm1, %v547_v26 }
  0x40   : > { %2086 = vmatmul.msk.f32.vlgmr.msrb.gmra.mxu3 %vm231_vm1, %v216_v20  ;;  %2120 = vmatmul.msk.f32.vlgmr.msrb.gmra.mxu0 %vm231_vm1, %v2102_v27 }
  0x47   : > { %2033 = vmatmul.msk.f32.gmra.mxu1 %vm231_vm1, %v366_v28  ;;  %2051 = vmatmul.msk.f32.gmra.mxu2 %vm231_vm1, %v548_v29 }
  0x48   : > { %2087 = vmatmul.msk.f32.gmra.mxu3 %vm231_vm1, %v217_v24  ;;  %2121 = vmatmul.msk.f32.gmra.mxu0 %vm231_vm1, %v2103_v30 }
  0x4f   : > { %2034 = vmatmul.msk.f32.gmra.mxu1 %vm231_vm1, %v2102_v27  ;;  %2052 = vmatmul.msk.f32.gmra.mxu2 %vm231_vm1, %v2685_v31 }
  0x50   : > { %2088 = vmatmul.msk.f32.gmra.mxu3 %vm231_vm1, %v2587_v5  ;;  %2122 = vmatmul.msk.f32.gmra.mxu0 %vm231_vm1, %v2688_v32 }
  0x57   : > { %2035 = vmatmul.msk.f32.gmra.mxu1 %vm231_vm1, %v2103_v30  ;;  %2053 = vmatmul.msk.f32.gmra.mxu2 %vm231_vm1, %v2698_v33 }
  0x58   : > { %2089 = vmatmul.msk.f32.gmra.mxu3 %vm231_vm1, %v2604_v9  ;;  %2123 = vmatmul.msk.f32.gmra.mxu0 %vm231_vm1, %v2701_v34 }
  0x5f   : > { %2036 = vmatmul.msk.f32.gmra.mxu1 %vm231_vm1, %v2688_v32  ;;  %2054 = vmatmul.msk.f32.gmra.mxu2 %vm231_vm1, %v2711_v35 }
  0x60   : > { %2090 = vmatmul.msk.f32.gmra.mxu3 %vm231_vm1, %v2637_v17  ;;  %2124 = vmatmul.msk.f32.gmra.mxu0 %vm231_vm1, %v2714_v36 }
  0x67   : > { %2037 = vmatmul.msk.f32.gmra.mxu1 %vm231_vm1, %v2701_v34  ;;  %2055 = vmatmul.msk.f32.gmra.mxu2 %vm231_vm1, %v2725_v37 }
  0x68   : > { %2091 = vmatmul.msk.f32.gmra.mxu3 %vm231_vm1, %v2654_v21  ;;  %2125 = vmatmul.msk.f32.gmra.mxu0 %vm231_vm1, %v2728_v38 }
  0x6f   : > { %2038 = vmatmul.msk.f32.gmra.mxu1 %vm231_vm1, %v2714_v36  ;;  %2056 = vmatmul.msk.f32.gmra.mxu2 %vm231_vm1, %v2739_v39 }
  0x70   : > { %2092 = vmatmul.msk.f32.gmra.mxu3 %vm231_vm1, %v2590_v6  ;;  %2126 = vmatmul.msk.f32.gmra.mxu0 %vm231_vm1, %v2742_v40 }
  0x77   : > { %2039 = vmatmul.msk.f32.gmra.mxu1 %vm231_vm1, %v2728_v38  ;;  %2057 = vmatmul.msk.f32.gmra.mxu2 %vm231_vm1, %v2753_v41 }
  0x78   : > { %2093 = vmatmul.msk.f32.gmra.mxu3 %vm231_vm1, %v2610_v11  ;;  %2127 = vmatmul.msk.f32.gmra.mxu0 %vm231_vm1, %v2756_v42 }
  0x7f   : > { %2040 = vmatmul.msk.f32.gmra.mxu1 %vm231_vm1, %v2742_v40  ;;  %2058 = vmatmul.msk.f32.gmra.mxu2 %vm231_vm1, %v2767_v43 }
  0x80   : > { %2094 = vmatmul.msk.f32.gmra.mxu3 %vm231_vm1, %v2640_v18  ;;  %2128 = vmatmul.msk.f32.gmra.mxu0 %vm231_vm1, %v2770_v44 }
  0x87   : > { %2041 = vmatmul.msk.f32.gmra.mxu1 %vm231_vm1, %v2756_v42  ;;  %2059 = vmatmul.msk.f32.gmra.mxu2 %vm231_vm1, %v2781_v45 }
  0x88   : > { %2095 = vmatmul.msk.f32.gmra.mxu3 %vm231_vm1, %v2657_v22  ;;  %2129 = vmatmul.msk.f32.gmra.mxu0 %vm231_vm1, %v2784_v46 }
  0x8f   : > { %2042 = vmatmul.msk.f32.gmra.mxu1 %vm231_vm1, %v2770_v44  ;;  %2060 = vmatmul.msk.f32.gmra.mxu2 %vm231_vm1, %v2795_v47 }
  0x90   : > { %2096 = vmatmul.msk.f32.gmra.mxu3 %vm231_vm1, %v2593_v7  ;;  %2130 = vmatmul.msk.f32.gmra.mxu0 %vm231_vm1, %v2798_v48 }
  0x97   : > { %2043 = vmatmul.msk.f32.gmra.mxu1 %vm231_vm1, %v2784_v46  ;;  %2061 = vmatmul.msk.f32.gmra.mxu2 %vm231_vm1, %v2809_v49 }
  0x98   : > { %2097 = vmatmul.msk.f32.gmra.mxu3 %vm231_vm1, %v2620_v14  ;;  %2131 = vmatmul.msk.f32.gmra.mxu0 %vm231_vm1, %v2812_v50 }
  0x9c   : > { %v2822_v51 = vpop.f32.mrf.mxu1 }
  0x9d   : > { %v301_v53 = vpop.f32.mrf.mxu0 }
  0x9f   : > { %2044 = vmatmul.msk.f32.gmra.mxu1 %vm231_vm1, %v2798_v48  ;;  %2062 = vmatmul.msk.f32.gmra.mxu2 %vm231_vm1, %v2825_v52 }
  0xa0   : > { %2098 = vmatmul.msk.f32.gmra.mxu3 %vm231_vm1, %v2643_v19  ;;  %2132 = vmatmul.msk.f32.gmra.mxu0 %vm231_vm1, %v2828_v54 }
  0xa2   : > { %v2838_v55 = vpop.f32.mrf.mxu2 }
  0xa3   : > { %v2840_v56 = vpop.f32.mrf.mxu3 }
  0xa4   : > { %v2842_v57 = vpop.f32.mrf.mxu1 }
  0xa5   : > { %v304_v59 = vpop.f32.mrf.mxu0 }
  0xa7   : > { %2045 = vmatmul.msk.f32.gmra.mxu1 %vm231_vm1, %v2812_v50  ;;  %2063 = vmatmul.msk.f32.gmra.mxu2 %vm231_vm1, %v2845_v58 }
  0xa8   : > { %2099 = vmatmul.msk.f32.gmra.mxu3 %vm231_vm1, %v2660_v23  ;;  %2133 = vmatmul.msk.f32.gmra.mxu0 %vm231_vm1, %v2848_v60 }
  0xaa   : > { %v2858_v61 = vpop.f32.mrf.mxu2 }
  0xab   : > { %v2860_v62 = vpop.f32.mrf.mxu3 }
  0xac   : > { %3211 = vst [vmem:[#allocation6_spill] sm:$0xff] %v2860_v62  ;;  %v2862_v63 = vpop.f32.mrf.mxu1 }
  0xad   : > { %v307_v2 = vpop.f32.mrf.mxu0 }
  0xaf   : > { %2046 = vmatmul.msk.f32.gmra.mxu1 %vm231_vm1, %v2828_v54  ;;  %2064 = vmatmul.msk.f32.gmra.mxu2 %vm231_vm1, %v2865_v0 }
  0xb0   : > { %2100 = vmatmul.msk.f32.gmra.mxu3 %vm231_vm1, %v2868_v1  ;;  %2134 = vmatmul.msk.f32.gmra.mxu0 %vm231_vm1, %v2871_v3 }
  0xb2   : > { %v2881_v4 = vpop.f32.mrf.mxu2 }
  0xb3   : > { %v2883_v8 = vpop.f32.mrf.mxu3 }
  0xb4   : > { %3212 = vst [vmem:[#allocation7_spill] sm:$0xff] %v2883_v8  ;;  %v2885_v10 = vpop.f32.mrf.mxu1 }
  0xb5   : > { %v310_v15 = vpop.f32.mrf.mxu0 }
  0xb7   : > { %2047 = vmatmul.msk.f32.gmra.mxu1 %vm231_vm1, %v2848_v60  ;;  %2065 = vmatmul.msk.f32.gmra.mxu2 %vm231_vm1, %v2888_v12 }
  0xb8   : > { %2101 = vmatmul.msk.f32.gmra.mxu3 %vm231_vm1, %v2891_v13  ;;  %2135 = vmatmul.msk.f32.gmra.mxu0 %vm231_vm1, %v2894_v16 }
  0xba   : > { %v2904_v20 = vpop.f32.mrf.mxu2 }
  0xbb   : > { %v2906_v24 = vpop.f32.mrf.mxu3 }
  0xbc   : > { %3214 = vst [vmem:[#allocation9_spill] sm:$0xff] %v2906_v24  ;;  %v451_v25 = vpop.f32.mrf.mxu1 }
  0xbd   : > { %v1000_v26 = vpop.f32.mrf.mxu0  ;;  %v515_v27 = vadd.f32 %v451_v25, %v301_v53 }
  0xbf   : > { %2154 = vmatmul.msk.f32.vlgmr.msra.gmra.mxu1 %vm231_vm1, %v2685_v31  ;;  %2190 = vmatmul.msk.f32.vlgmr.msra.gmra.mxu2 %vm231_vm1, %v2587_v5 }
  0xc0   : > { %2224 = vmatmul.msk.f32.vlgmr.msra.gmra.mxu3 %vm231_vm1, %v2688_v32  ;;  %2258 = vmatmul.msk.f32.vlgmr.msra.gmra.mxu0 %vm231_vm1, %v2711_v35 }
  0xc2   : > { %v633_v28 = vpop.f32.mrf.mxu2 }
  0xc3   : > { %v697_v29 = vadd.f32 %v633_v28, %v515_v27  ;;  %v818_v30 = vpop.f32.mrf.mxu3 }
  0xc4   : > { %v454_v8 = vpop.f32.mrf.mxu1 }
  0xc5   : > { %v882_v24 = vadd.f32 %v818_v30, %v697_v29  ;;  %v1003_v62 = vpop.f32.mrf.mxu0  ;;  %v516_v5 = vadd.f32 %v454_v8, %v304_v59 }
  0xc7   : > { %v2916_v16 = vadd.f32 %v1000_v26, %v882_v24  ;;  %2155 = vmatmul.msk.f32.gmra.mxu1 %vm231_vm1, %v2698_v33  ;;  %2191 = vmatmul.msk.f32.gmra.mxu2 %vm231_vm1, %v2604_v9 }
  0xc8   : > { %2225 = vmatmul.msk.f32.gmra.mxu3 %vm231_vm1, %v2701_v34  ;;  %2259 = vmatmul.msk.f32.gmra.mxu0 %vm231_vm1, %v2725_v37 }
  0xca   : > { %v636_v31 = vpop.f32.mrf.mxu2 }
  0xcb   : > { %v698_v32 = vadd.f32 %v636_v31, %v516_v5  ;;  %v821_v53 = vpop.f32.mrf.mxu3 }
  0xcc   : > { %v457_v25 = vpop.f32.mrf.mxu1 }
  0xcd   : > { %v883_v27 = vadd.f32 %v821_v53, %v698_v32  ;;  %v1006_v24 = vpop.f32.mrf.mxu0  ;;  %v517_v9 = vadd.f32 %v457_v25, %v307_v2 }
  0xcf   : > { %v2926_v26 = vadd.f32 %v1003_v62, %v883_v27  ;;  %2156 = vmatmul.msk.f32.gmra.mxu1 %vm231_vm1, %v2711_v35  ;;  %2192 = vmatmul.msk.f32.gmra.mxu2 %vm231_vm1, %v2637_v17 }
  0xd0   : > { %2226 = vmatmul.msk.f32.gmra.mxu3 %vm231_vm1, %v2714_v36  ;;  %2260 = vmatmul.msk.f32.gmra.mxu0 %vm231_vm1, %v2739_v39 }
  0xd2   : > { %v639_v33 = vpop.f32.mrf.mxu2 }
  0xd3   : > { %v699_v34 = vadd.f32 %v639_v33, %v517_v9  ;;  %v824_v59 = vpop.f32.mrf.mxu3 }
  0xd4   : > { %v460_v8 = vpop.f32.mrf.mxu1 }
  0xd5   : > { %v884_v28 = vadd.f32 %v824_v59, %v699_v34  ;;  %v1009_v62 = vpop.f32.mrf.mxu0  ;;  %v518_v17 = vadd.f32 %v460_v8, %v310_v15 }
  0xd7   : > { %v2936_v29 = vadd.f32 %v1006_v24, %v884_v28  ;;  %2157 = vmatmul.msk.f32.gmra.mxu1 %vm231_vm1, %v2725_v37  ;;  %2193 = vmatmul.msk.f32.gmra.mxu2 %vm231_vm1, %v2654_v21 }
  0xd8   : > { %2227 = vmatmul.msk.f32.gmra.mxu3 %vm231_vm1, %v2728_v38  ;;  %2261 = vmatmul.msk.f32.gmra.mxu0 %vm231_vm1, %v2753_v41 }
  0xda   : > { %v642_v35 = vpop.f32.mrf.mxu2 }
  0xdb   : > { %v700_v36 = vadd.f32 %v642_v35, %v518_v17  ;;  %v827_v2 = vpop.f32.mrf.mxu3 }
  0xdc   : > { %v463_v30 = vpop.f32.mrf.mxu1 }
  0xdd   : > { %v885_v5 = vadd.f32 %v827_v2, %v700_v36  ;;  %v1012_v31 = vpop.f32.mrf.mxu0  ;;  %v519_v21 = vadd.f32 %v463_v30, %v2822_v51 }
  0xdf   : > { %v2946_v32 = vadd.f32 %v1009_v62, %v885_v5  ;;  %2158 = vmatmul.msk.f32.gmra.mxu1 %vm231_vm1, %v2739_v39  ;;  %2194 = vmatmul.msk.f32.gmra.mxu2 %vm231_vm1, %v2590_v6 }
  0xe0   : > { %2228 = vmatmul.msk.f32.gmra.mxu3 %vm231_vm1, %v2742_v40  ;;  %2262 = vmatmul.msk.f32.gmra.mxu0 %vm231_vm1, %v2767_v43 }
  0xe2   : > { %v645_v37 = vpop.f32.mrf.mxu2 }
  0xe3   : > { %v701_v38 = vadd.f32 %v645_v37, %v519_v21  ;;  %v830_v15 = vpop.f32.mrf.mxu3 }
  0xe4   : > { %v466_v53 = vpop.f32.mrf.mxu1 }
  0xe5   : > { %v886_v25 = vadd.f32 %v830_v15, %v701_v38  ;;  %v1015_v27 = vpop.f32.mrf.mxu0  ;;  %v520_v6 = vadd.f32 %v466_v53, %v2842_v57 }
  0xe7   : > { %v2957_v24 = vadd.f32 %v1012_v31, %v886_v25  ;;  %2159 = vmatmul.msk.f32.gmra.mxu1 %vm231_vm1, %v2753_v41  ;;  %2195 = vmatmul.msk.f32.gmra.mxu2 %vm231_vm1, %v2610_v11 }
  0xe8   : > { %2229 = vmatmul.msk.f32.gmra.mxu3 %vm231_vm1, %v2756_v42  ;;  %2263 = vmatmul.msk.f32.gmra.mxu0 %vm231_vm1, %v2781_v45 }
  0xea   : > { %v648_v39 = vpop.f32.mrf.mxu2 }
  0xeb   : > { %v702_v40 = vadd.f32 %v648_v39, %v520_v6  ;;  %v833_v51 = vpop.f32.mrf.mxu3 }
  0xec   : > { %v469_v9 = vpop.f32.mrf.mxu1 }
  0xed   : > { %v887_v33 = vadd.f32 %v833_v51, %v702_v40  ;;  %v1018_v34 = vpop.f32.mrf.mxu0  ;;  %v521_v11 = vadd.f32 %v469_v9, %v2862_v63 }
  0xef   : > { %v2968_v59 = vadd.f32 %v1015_v27, %v887_v33  ;;  %2160 = vmatmul.msk.f32.gmra.mxu1 %vm231_vm1, %v2767_v43  ;;  %2196 = vmatmul.msk.f32.gmra.mxu2 %vm231_vm1, %v2640_v18 }
  0xf0   : > { %2230 = vmatmul.msk.f32.gmra.mxu3 %vm231_vm1, %v2770_v44  ;;  %2264 = vmatmul.msk.f32.gmra.mxu0 %vm231_vm1, %v2795_v47 }
  0xf2   : > { %v651_v41 = vpop.f32.mrf.mxu2 }
  0xf3   : > { %v703_v42 = vadd.f32 %v651_v41, %v521_v11  ;;  %v836_v57 = vpop.f32.mrf.mxu3 }
  0xf4   : > { %v472_v8 = vpop.f32.mrf.mxu1 }
  0xf5   : > { %v888_v28 = vadd.f32 %v836_v57, %v703_v42  ;;  %v1021_v62 = vpop.f32.mrf.mxu0  ;;  %v522_v18 = vadd.f32 %v472_v8, %v2885_v10 }
  0xf7   : > { %v2979_v17 = vadd.f32 %v1018_v34, %v888_v28  ;;  %2161 = vmatmul.msk.f32.gmra.mxu1 %vm231_vm1, %v2781_v45  ;;  %2197 = vmatmul.msk.f32.gmra.mxu2 %vm231_vm1, %v2657_v22  ;;  %v2252_v34 = vld [vmem:[%s2584_s11 + $0xc2] sm:$0xff] }
  0xf8   : > { %2231 = vmatmul.msk.f32.gmra.mxu3 %vm231_vm1, %v2784_v46  ;;  %2265 = vmatmul.msk.f32.gmra.mxu0 %vm231_vm1, %v2809_v49 }
  0xfa   : > { %v654_v43 = vpop.f32.mrf.mxu2 }
  0xfb   : > { %v704_v44 = vadd.f32 %v654_v43, %v522_v18  ;;  %v839_v63 = vpop.f32.mrf.mxu3 }
  0xfc   : > { %v475_v35 = vpop.f32.mrf.mxu1 }
  0xfd   : > { %v889_v36 = vadd.f32 %v839_v63, %v704_v44  ;;  %v1024_v2 = vpop.f32.mrf.mxu0  ;;  %v523_v22 = vadd.f32 %v475_v35, %v2838_v55  ;;  %v2186_v44 = vld [vmem:[%s2584_s11 + $0xd8] sm:$0xff] }
  0xfe   : > { %v2220_v35 = vld [vmem:[%s2584_s11 + $0xd9] sm:$0xff] }
  0xff   : > { %v2990_v30 = vadd.f32 %v1021_v62, %v889_v36  ;;  %2162 = vmatmul.msk.f32.gmra.mxu1 %vm231_vm1, %v2795_v47  ;;  %2198 = vmatmul.msk.f32.gmra.mxu2 %vm231_vm1, %v2593_v7  ;;  %v2254_v36 = vld [vmem:[%s2584_s11 + $0xda] sm:$0xff] }
 0x100   : > { %2232 = vmatmul.msk.f32.gmra.mxu3 %vm231_vm1, %v2798_v48  ;;  %2266 = vmatmul.msk.f32.gmra.mxu0 %vm231_vm1, %v2825_v52 }
 0x102   : > { %v657_v45 = vpop.f32.mrf.mxu2 }
 0x103   : > { %v705_v46 = vadd.f32 %v657_v45, %v523_v22  ;;  %v842_v10 = vpop.f32.mrf.mxu3 }
 0x104   : > { %v478_v5 = vpop.f32.mrf.mxu1 }
 0x105   : > { %v890_v31 = vadd.f32 %v842_v10, %v705_v46  ;;  %v1027_v21 = vpop.f32.mrf.mxu0  ;;  %v524_v7 = vadd.f32 %v478_v5, %v2858_v61 }
 0x107   : > { %v3001_v37 = vadd.f32 %v1024_v2, %v890_v31  ;;  %2163 = vmatmul.msk.f32.gmra.mxu1 %vm231_vm1, %v2809_v49  ;;  %2199 = vmatmul.msk.f32.gmra.mxu2 %vm231_vm1, %v2620_v14  ;;  %v3217_v2 = vld [vmem:[#allocation7_spill] sm:$0xff]  ;;  %v2187_v31 = vld [vmem:[%s2584_s11 + $0xe0] sm:$0xff] }
 0x108   : > { %2233 = vmatmul.msk.f32.gmra.mxu3 %vm231_vm1, %v2812_v50  ;;  %2267 = vmatmul.msk.f32.gmra.mxu0 %vm231_vm1, %v2845_v58 }
 0x10a   : > { %v660_v47 = vpop.f32.mrf.mxu2 }
 0x10b   : > { %v706_v48 = vadd.f32 %v660_v47, %v524_v7  ;;  %v845_v55 = vpop.f32.mrf.mxu3  ;;  %v2221_v7 = vld [vmem:[%s2584_s11 + $0xe1] sm:$0xff] }
 0x10c   : > { %v481_v38 = vpop.f32.mrf.mxu1 }
 0x10d   : > { %v891_v15 = vadd.f32 %v845_v55, %v706_v48  ;;  %v1030_v53 = vpop.f32.mrf.mxu0  ;;  %v525_v14 = vadd.f32 %v481_v38, %v2881_v4  ;;  %v2255_v48 = vld [vmem:[%s2584_s11 + $0xe2] sm:$0xff]  ;;  %v3218_v38 = vld [vmem:[#allocation9_spill] sm:$0xff] }
 0x10f   : > { %v3012_v25 = vadd.f32 %v1027_v21, %v891_v15  ;;  %2164 = vmatmul.msk.f32.gmra.mxu1 %vm231_vm1, %v2825_v52  ;;  %2200 = vmatmul.msk.f32.gmra.mxu2 %vm231_vm1, %v2643_v19 }
 0x110   : > { %2234 = vmatmul.msk.f32.gmra.mxu3 %vm231_vm1, %v2828_v54  ;;  %2268 = vmatmul.msk.f32.gmra.mxu0 %vm231_vm1, %v2865_v0 }
 0x112   : > { %v663_v49 = vpop.f32.mrf.mxu2 }
 0x113   : > { %v707_v50 = vadd.f32 %v663_v49, %v525_v14  ;;  %v848_v61 = vpop.f32.mrf.mxu3 }
 0x114   : > { %v484_v27 = vpop.f32.mrf.mxu1 }
 0x115   : > { %v892_v6 = vadd.f32 %v848_v61, %v707_v50  ;;  %v1033_v39 = vpop.f32.mrf.mxu0  ;;  %v526_v19 = vadd.f32 %v484_v27, %v2904_v20 }
 0x117   : > { %v3023_v40 = vadd.f32 %v1030_v53, %v892_v6  ;;  %2165 = vmatmul.msk.f32.gmra.mxu1 %vm231_vm1, %v2845_v58  ;;  %2201 = vmatmul.msk.f32.gmra.mxu2 %vm231_vm1, %v2660_v23 }
 0x118   : > { %2235 = vmatmul.msk.f32.gmra.mxu3 %vm231_vm1, %v2848_v60  ;;  %2269 = vmatmul.msk.f32.gmra.mxu0 %vm231_vm1, %v2888_v12 }
 0x11a   : > { %v666_v52 = vpop.f32.mrf.mxu2 }
 0x11b   : > { %v708_v54 = vadd.f32 %v666_v52, %v526_v19  ;;  %v851_v4 = vpop.f32.mrf.mxu3 }
 0x11c   : > { %v487_v51 = vpop.f32.mrf.mxu1 }
 0x11d   : > { %v893_v9 = vadd.f32 %v851_v4, %v708_v54  ;;  %v1036_v33 = vpop.f32.mrf.mxu0  ;;  %v527_v23 = vadd.f32 %v487_v51, %v2840_v56  ;;  %v3216_v56 = vld [vmem:[#allocation6_spill] sm:$0xff] }
 0x11f   : > { %v3035_v58 = vadd.f32 %v1033_v39, %v893_v9  ;;  %2166 = vmatmul.msk.f32.gmra.mxu1 %vm231_vm1, %v2865_v0  ;;  %2202 = vmatmul.msk.f32.gmra.mxu2 %vm231_vm1, %v2868_v1  ;;  %v2253_v0 = vld [vmem:[%s2584_s11 + $0xca] sm:$0xff]  ;;  %v3083_v9 = vld [vmem:[%s3205_s2] ss:$0 sm:$0xff]  ;;  %s2377_s11 = scalar_lea.hbm %s2376_s10, 128 }
 0x120   : > { %2236 = vmatmul.msk.f32.gmra.mxu3 %vm231_vm1, %v2871_v3  ;;  %2270 = vmatmul.msk.f32.gmra.mxu0 %vm231_vm1, %v2252_v34  ;;  %v3215_v1 = vld [vmem:[#allocation8_spill] sm:$0xff]  ;;  %p2378_p13 = scmp.ne.s32.totalorder %s2376_s10, %s2377_s11  ;;  %p2383_p4 = scmp.lt.s32.totalorder %s2381_s23, %s2377_s11 }
 0x122   : > { %v669_v60 = vpop.f32.mrf.mxu2  ;;  %p2379_p0 = pnand %p2378_p13, %p2535_p3  ;;  %p2384_p5 = por %p2383_p4, %p2382_p2 }
 0x123   : > { %v709_v20 = vadd.f32 %v669_v60, %v527_v23  ;;  %v854_v11 = vpop.f32.mrf.mxu3  ;;  %v3090_v23 = vld [vmem:[%s3206_s3] ss:$0 sm:$0xff] }
 0x124   : > { %v490_v41 = vpop.f32.mrf.mxu1  ;;  %p2380_p1 = pneg %p2379_p0 }
 0x125   : > { %v894_v42 = vadd.f32 %v854_v11, %v709_v20  ;;  %v1039_v57 = vpop.f32.mrf.mxu0  ;;  %v528_v3 = vadd.f32 %v490_v41, %v3216_v56 }
 0x126   : > { %p2385_p6 = pnand %p2384_p5, %p2380_p1 }
 0x127   : > { %v3046_v8 = vadd.f32 %v1036_v33, %v894_v42  ;;  %2167 = vmatmul.msk.f32.gmra.mxu1 %vm231_vm1, %v2888_v12  ;;  %2203 = vmatmul.msk.f32.gmra.mxu2 %vm231_vm1, %v2891_v13 }
 0x128   : > { %2237 = vmatmul.msk.f32.gmra.mxu3 %vm231_vm1, %v3215_v1  ;;  %2271 = vmatmul.msk.f32.gmra.mxu0 %vm231_vm1, %v2253_v0 }
 0x12a   : > { %v672_v28 = vpop.f32.mrf.mxu2 }
 0x12b   : > { %v710_v62 = vadd.f32 %v672_v28, %v528_v3  ;;  %v857_v18 = vpop.f32.mrf.mxu3 }
 0x12c   : > { %v493_v43 = vpop.f32.mrf.mxu1 }
 0x12d   : > { %v895_v63 = vadd.f32 %v857_v18, %v710_v62  ;;  %v1042_v12 = vpop.f32.mrf.mxu0  ;;  %v529_v22 = vadd.f32 %v493_v43, %v3217_v2 }
 0x12f   : > { %v3059_v13 = vadd.f32 %v1039_v57, %v895_v63  ;;  %2168 = vmatmul.msk.f32.gmra.mxu1 %vm231_vm1, %v2252_v34  ;;  %2204 = vmatmul.msk.f32.gmra.mxu2 %vm231_vm1, %v2186_v44 }
 0x130   : > { %2238 = vmatmul.msk.f32.gmra.mxu3 %vm231_vm1, %v2220_v35  ;;  %2272 = vmatmul.msk.f32.gmra.mxu0 %vm231_vm1, %v2254_v36 }
 0x132   : > { %v675_v45 = vpop.f32.mrf.mxu2 }
 0x133   : > { %v711_v46 = vadd.f32 %v675_v45, %v529_v22  ;;  %v860_v10 = vpop.f32.mrf.mxu3 }
 0x134   : > { %v496_v5 = vpop.f32.mrf.mxu1 }
 0x135   : > { %v896_v21 = vadd.f32 %v860_v10, %v711_v46  ;;  %v1045_v47 = vpop.f32.mrf.mxu0  ;;  %v530_v15 = vadd.f32 %v496_v5, %v3218_v38 }
 0x137   : > { %v3069_v55 = vadd.f32 %v1042_v12, %v896_v21  ;;  %2169 = vmatmul.msk.f32.gmra.mxu1 %vm231_vm1, %v2253_v0  ;;  %2205 = vmatmul.msk.f32.gmra.mxu2 %vm231_vm1, %v2187_v31 }
 0x138   : > { %2239 = vmatmul.msk.f32.gmra.mxu3 %vm231_vm1, %v2221_v7  ;;  %2273 = vmatmul.msk.f32.gmra.mxu0 %vm231_vm1, %v2255_v48 }
 0x13a   : > { %v678_v53 = vpop.f32.mrf.mxu2 }
 0x13b   : > { %v712_v14 = vadd.f32 %v678_v53, %v530_v15  ;;  %v863_v49 = vpop.f32.mrf.mxu3 }
 0x13c   : > { %v1182_v50 = vpop.f32.mrf.mxu1 }
 0x13d   : > { %v897_v61 = vadd.f32 %v863_v49, %v712_v14  ;;  %v1731_v27 = vpop.f32.mrf.mxu0  ;;  %v1246_v39 = vadd.f32 %v1182_v50, %v2916_v16 }
 0x13f   : > { %v3076_v6 = vadd.f32 %v1045_v47, %v897_v61 }
 0x142   : > { %v1367_v19 = vpop.f32.mrf.mxu2 }
 0x143   : > { %v1431_v52 = vadd.f32 %v1367_v19, %v1246_v39  ;;  %v1549_v54 = vpop.f32.mrf.mxu3 }
 0x144   : > { %v1185_v4 = vpop.f32.mrf.mxu1 }
 0x145   : > { %v1613_v51 = vadd.f32 %v1549_v54, %v1431_v52  ;;  %v1734_v33 = vpop.f32.mrf.mxu0  ;;  %v1247_v16 = vadd.f32 %v1185_v4, %v2926_v26 }
 0x147   : > { %v1795_v34 = vadd.f32 %v1731_v27, %v1613_v51 }
 0x149   : > { %v1847_v60 = vmul.f32 %v3083_v9, %v1795_v34 }
 0x14a   : > { %v1370_v20 = vpop.f32.mrf.mxu2 }
 0x14b   : > { %v1867_v11 = vadd.f32 %v3090_v23, %v1847_v60  ;;  %v1432_v41 = vadd.f32 %v1370_v20, %v1247_v16  ;;  %v1552_v42 = vpop.f32.mrf.mxu3 }
 0x14c   : > { %v1188_v57 = vpop.f32.mrf.mxu1 }
 0x14d   : > { %1883 = vst [vmem:[%s3095_s13] sm:$0xff] %v1867_v11  ;;  %v1614_v0 = vadd.f32 %v1552_v42, %v1432_v41  ;;  %v1737_v1 = vpop.f32.mrf.mxu0  ;;  %v1248_v3 = vadd.f32 %v1188_v57, %v2936_v29 }
 0x14f   : > { %v1796_v56 = vadd.f32 %v1734_v33, %v1614_v0 }
 0x151   : > { %v1848_v26 = vmul.f32 %v3083_v9, %v1796_v56 }
 0x152   : > { %v1373_v28 = vpop.f32.mrf.mxu2 }
 0x153   : > { %v1868_v62 = vadd.f32 %v3090_v23, %v1848_v26  ;;  %v1433_v18 = vadd.f32 %v1373_v28, %v1248_v3  ;;  %v1555_v43 = vpop.f32.mrf.mxu3 }
 0x154   : > { %v1191_v44 = vpop.f32.mrf.mxu1 }
 0x155   : > { %1884 = vst [vmem:[%s3095_s13 + $0x8] sm:$0xff] %v1868_v62  ;;  %v1615_v63 = vadd.f32 %v1555_v43, %v1433_v18  ;;  %v1740_v35 = vpop.f32.mrf.mxu0  ;;  %v1249_v36 = vadd.f32 %v1191_v44, %v2946_v32 }
 0x157   : > { %v1797_v12 = vadd.f32 %v1737_v1, %v1615_v63 }
 0x159   : > { %v1849_v2 = vmul.f32 %v3083_v9, %v1797_v12 }
 0x15a   : > { %v1376_v22 = vpop.f32.mrf.mxu2 }
 0x15b   : > { %v1869_v29 = vadd.f32 %v3090_v23, %v1849_v2  ;;  %v1434_v45 = vadd.f32 %v1376_v22, %v1249_v36  ;;  %v1558_v46 = vpop.f32.mrf.mxu3 }
 0x15c   : > { %v1194_v10 = vpop.f32.mrf.mxu1 }
 0x15d   : > { %1885 = vst [vmem:[%s3095_s13 + $0x10] sm:$0xff] %v1869_v29  ;;  %v1616_v5 = vadd.f32 %v1558_v46, %v1434_v45  ;;  %v1743_v31 = vpop.f32.mrf.mxu0  ;;  %v1250_v7 = vadd.f32 %v1194_v10, %v2957_v24 }
 0x15f   : > { %v1798_v21 = vadd.f32 %v1740_v35, %v1616_v5 }
 0x161   : > { %v1850_v47 = vmul.f32 %v3083_v9, %v1798_v21 }
 0x162   : > { %v1379_v48 = vpop.f32.mrf.mxu2 }
 0x163   : > { %v1870_v32 = vadd.f32 %v3090_v23, %v1850_v47  ;;  %v1435_v38 = vadd.f32 %v1379_v48, %v1250_v7  ;;  %v1561_v15 = vpop.f32.mrf.mxu3 }
 0x164   : > { %v1197_v53 = vpop.f32.mrf.mxu1 }
 0x165   : > { %1886 = vst [vmem:[%s3095_s13 + $0x18] sm:$0xff] %v1870_v32  ;;  %v1617_v14 = vadd.f32 %v1561_v15, %v1435_v38  ;;  %v1746_v49 = vpop.f32.mrf.mxu0  ;;  %v1251_v61 = vadd.f32 %v1197_v53, %v2968_v59 }
 0x167   : > { %v1799_v50 = vadd.f32 %v1743_v31, %v1617_v14 }
 0x169   : > { %v1851_v27 = vmul.f32 %v3083_v9, %v1799_v50 }
 0x16a   : > { %v1382_v39 = vpop.f32.mrf.mxu2 }
 0x16b   : > { %v1871_v24 = vadd.f32 %v3090_v23, %v1851_v27  ;;  %v1436_v19 = vadd.f32 %v1382_v39, %v1251_v61  ;;  %v1564_v52 = vpop.f32.mrf.mxu3 }
 0x16c   : > { %v1200_v54 = vpop.f32.mrf.mxu1 }
 0x16d   : > { %1887 = vst [vmem:[%s3095_s13 + $0x20] sm:$0xff] %v1871_v24  ;;  %v1618_v4 = vadd.f32 %v1564_v52, %v1436_v19  ;;  %v1749_v51 = vpop.f32.mrf.mxu0  ;;  %v1252_v34 = vadd.f32 %v1200_v54, %v2979_v17 }
 0x16f   : > { %v1800_v33 = vadd.f32 %v1746_v49, %v1618_v4 }
 0x171   : > { %v1852_v16 = vmul.f32 %v3083_v9, %v1800_v33 }
 0x172   : > { %v1385_v60 = vpop.f32.mrf.mxu2 }
 0x173   : > { %v1872_v59 = vadd.f32 %v3090_v23, %v1852_v16  ;;  %v1437_v20 = vadd.f32 %v1385_v60, %v1252_v34  ;;  %v1567_v11 = vpop.f32.mrf.mxu3 }
 0x174   : > { %v1203_v41 = vpop.f32.mrf.mxu1 }
 0x175   : > { %1888 = vst [vmem:[%s3095_s13 + $0x28] sm:$0xff] %v1872_v59  ;;  %v1619_v42 = vadd.f32 %v1567_v11, %v1437_v20  ;;  %v1752_v57 = vpop.f32.mrf.mxu0  ;;  %v1253_v1 = vadd.f32 %v1203_v41, %v2990_v30 }
 0x177   : > { %v1801_v0 = vadd.f32 %v1749_v51, %v1619_v42 }
 0x179   : > { %v1853_v56 = vmul.f32 %v3083_v9, %v1801_v0 }
 0x17a   : > { %v1388_v3 = vpop.f32.mrf.mxu2 }
 0x17b   : > { %v1873_v17 = vadd.f32 %v3090_v23, %v1853_v56  ;;  %v1438_v26 = vadd.f32 %v1388_v3, %v1253_v1  ;;  %v1570_v28 = vpop.f32.mrf.mxu3 }
 0x17c   : > { %v1206_v62 = vpop.f32.mrf.mxu1 }
 0x17d   : > { %1889 = vst [vmem:[%s3095_s13 + $0x30] sm:$0xff] %v1873_v17  ;;  %v1620_v18 = vadd.f32 %v1570_v28, %v1438_v26  ;;  %v1755_v43 = vpop.f32.mrf.mxu0  ;;  %v1254_v63 = vadd.f32 %v1206_v62, %v3001_v37 }
 0x17f   : > { %v1802_v44 = vadd.f32 %v1752_v57, %v1620_v18 }
 0x181   : > { %v1854_v35 = vmul.f32 %v3083_v9, %v1802_v44 }
 0x182   : > { %v1391_v12 = vpop.f32.mrf.mxu2 }
 0x183   : > { %v1874_v30 = vadd.f32 %v3090_v23, %v1854_v35  ;;  %v1439_v36 = vadd.f32 %v1391_v12, %v1254_v63  ;;  %v1573_v2 = vpop.f32.mrf.mxu3 }
 0x184   : > { %v1209_v22 = vpop.f32.mrf.mxu1 }
 0x185   : > { %1890 = vst [vmem:[%s3095_s13 + $0x38] sm:$0xff] %v1874_v30  ;;  %v1621_v29 = vadd.f32 %v1573_v2, %v1439_v36  ;;  %v1758_v45 = vpop.f32.mrf.mxu0  ;;  %v1255_v10 = vadd.f32 %v1209_v22, %v3012_v25 }
 0x187   : > { %v1803_v46 = vadd.f32 %v1755_v43, %v1621_v29 }
 0x189   : > { %v1855_v5 = vmul.f32 %v3083_v9, %v1803_v46 }
 0x18a   : > { %v1394_v31 = vpop.f32.mrf.mxu2 }
 0x18b   : > { %v1875_v37 = vadd.f32 %v3090_v23, %v1855_v5  ;;  %v1440_v21 = vadd.f32 %v1394_v31, %v1255_v10  ;;  %v1576_v7 = vpop.f32.mrf.mxu3 }
 0x18c   : > { %v1212_v47 = vpop.f32.mrf.mxu1 }
 0x18d   : > { %1891 = vst [vmem:[%s3095_s13 + $0x40] sm:$0xff] %v1875_v37  ;;  %v1622_v48 = vadd.f32 %v1576_v7, %v1440_v21  ;;  %v1761_v32 = vpop.f32.mrf.mxu0  ;;  %v1256_v15 = vadd.f32 %v1212_v47, %v3023_v40 }
 0x18f   : > { %v1804_v38 = vadd.f32 %v1758_v45, %v1622_v48 }
 0x191   : > { %v1856_v53 = vmul.f32 %v3083_v9, %v1804_v38 }
 0x192   : > { %v1397_v14 = vpop.f32.mrf.mxu2 }
 0x193   : > { %v1876_v25 = vadd.f32 %v3090_v23, %v1856_v53  ;;  %v1441_v49 = vadd.f32 %v1397_v14, %v1256_v15  ;;  %v1579_v50 = vpop.f32.mrf.mxu3 }
 0x194   : > { %v1215_v61 = vpop.f32.mrf.mxu1 }
 0x195   : > { %1892 = vst [vmem:[%s3095_s13 + $0x48] sm:$0xff] %v1876_v25  ;;  %v1623_v27 = vadd.f32 %v1579_v50, %v1441_v49  ;;  %v1764_v39 = vpop.f32.mrf.mxu0  ;;  %v1257_v19 = vadd.f32 %v1215_v61, %v3035_v58 }
 0x197   : > { %v1805_v24 = vadd.f32 %v1761_v32, %v1623_v27 }
 0x199   : > { %v1857_v52 = vmul.f32 %v3083_v9, %v1805_v24 }
 0x19a   : > { %v1400_v54 = vpop.f32.mrf.mxu2 }
 0x19b   : > { %v1877_v40 = vadd.f32 %v3090_v23, %v1857_v52  ;;  %v1442_v4 = vadd.f32 %v1400_v54, %v1257_v19  ;;  %v1582_v51 = vpop.f32.mrf.mxu3 }
 0x19c   : > { %v1218_v33 = vpop.f32.mrf.mxu1 }
 0x19d   : > { %1893 = vst [vmem:[%s3095_s13 + $0x50] sm:$0xff] %v1877_v40  ;;  %v1624_v34 = vadd.f32 %v1582_v51, %v1442_v4  ;;  %v1767_v16 = vpop.f32.mrf.mxu0  ;;  %v1258_v59 = vadd.f32 %v1218_v33, %v3046_v8 }
 0x19f   : > { %v1806_v60 = vadd.f32 %v1764_v39, %v1624_v34 }
 0x1a1   : > { %v1858_v20 = vmul.f32 %v3083_v9, %v1806_v60 }
 0x1a2   : > { %v1403_v11 = vpop.f32.mrf.mxu2 }
 0x1a3   : > { %v1878_v58 = vadd.f32 %v3090_v23, %v1858_v20  ;;  %v1443_v41 = vadd.f32 %v1403_v11, %v1258_v59  ;;  %v1585_v42 = vpop.f32.mrf.mxu3 }
 0x1a4   : > { %v1221_v57 = vpop.f32.mrf.mxu1 }
 0x1a5   : > { %1894 = vst [vmem:[%s3095_s13 + $0x58] sm:$0xff] %v1878_v58  ;;  %v1625_v0 = vadd.f32 %v1585_v42, %v1443_v41  ;;  %v1770_v56 = vpop.f32.mrf.mxu0  ;;  %v1259_v3 = vadd.f32 %v1221_v57, %v3059_v13 }
 0x1a7   : > { %v1807_v1 = vadd.f32 %v1767_v16, %v1625_v0 }
 0x1a9   : > { %v1859_v17 = vmul.f32 %v3083_v9, %v1807_v1 }
 0x1aa   : > { %v1406_v26 = vpop.f32.mrf.mxu2 }
 0x1ab   : > { %v1879_v8 = vadd.f32 %v3090_v23, %v1859_v17  ;;  %v1444_v28 = vadd.f32 %v1406_v26, %v1259_v3  ;;  %v1588_v62 = vpop.f32.mrf.mxu3 }
 0x1ac   : > { %v1224_v18 = vpop.f32.mrf.mxu1 }
 0x1ad   : > { %1895 = vst [vmem:[%s3095_s13 + $0x60] sm:$0xff] %v1879_v8  ;;  %v1626_v43 = vadd.f32 %v1588_v62, %v1444_v28  ;;  %v1260_v63 = vadd.f32 %v1224_v18, %v3069_v55  ;;  %v1773_v13 = vpop.f32.mrf.mxu0 }
 0x1af   : > { %v1808_v44 = vadd.f32 %v1770_v56, %v1626_v43 }
 0x1b1   : > { %v1860_v35 = vmul.f32 %v3083_v9, %v1808_v44 }
 0x1b2   : > { %v1409_v12 = vpop.f32.mrf.mxu2 }
 0x1b3   : > { %v1880_v30 = vadd.f32 %v3090_v23, %v1860_v35  ;;  %v1445_v36 = vadd.f32 %v1409_v12, %v1260_v63  ;;  %v1591_v2 = vpop.f32.mrf.mxu3 }
 0x1b4   : > { %v1227_v29 = vpop.f32.mrf.mxu1 }
 0x1b5   : > { %1896 = vst [vmem:[%s3095_s13 + $0x68] sm:$0xff] %v1880_v30  ;;  %v1627_v22 = vadd.f32 %v1591_v2, %v1445_v36  ;;  %v1261_v46 = vadd.f32 %v1227_v29, %v3076_v6  ;;  %v1776_v21 = vpop.f32.mrf.mxu0 }
 0x1b7   : > { %v1809_v45 = vadd.f32 %v1773_v13, %v1627_v22 }
 0x1b9   : > { %v1861_v55 = vmul.f32 %v3083_v9, %v1809_v45 }
 0x1ba   : > { %v1412_v10 = vpop.f32.mrf.mxu2 }
 0x1bb   : > { %v1881_v5 = vadd.f32 %v3090_v23, %v1861_v55  ;;  %v1446_v31 = vadd.f32 %v1412_v10, %v1261_v46  ;;  %v1594_v37 = vpop.f32.mrf.mxu3 }
 0x1bd   : > { %1897 = vst [vmem:[%s3095_s13 + $0x70] sm:$0xff] %v1881_v5  ;;  %v1628_v7 = vadd.f32 %v1594_v37, %v1446_v31 }
 0x1bf   : > { %v1810_v47 = vadd.f32 %v1776_v21, %v1628_v7 }
 0x1c1   : > { %v1862_v6 = vmul.f32 %v3083_v9, %v1810_v47 }
 0x1c3   : > { %v1882_v48 = vadd.f32 %v3090_v23, %v1862_v6 }
 0x1c5   : > { %1898 = vst [vmem:[%s3095_s13 + $0x78] sm:$0xff] %v1882_v48 }
 0x1c6   : > { %2388 = shalt.err (!%p2385_p6)
}
 0x1c7   : > { %s2457_s6 = smov 128   ;;  %s2458_s13 = smov 8  }
 0x1c8   : > { %2286 = dma.vmem_to_hbm [thread:$0]  (%p2535_p3), %s1916_s5, 2048, %s1918_s8, %s1900_s9, %s2457_s6, %s2457_s6, %s2458_s13  }
 0x1c9 PF: > { %p2292_p7 = scmp.ge.s32.totalorder %s2455_s22, 2  ;;  %s1932_s18 = sand.u32 1, %s2427_s15  }
 0x1ca   : > { %s1933_s19 = scalar_lea.sflag [#allocation4], %s1932_s18 }
 0x1cb   : > { %p2289_p9 = pnand %p2292_p7, %p2544_p8 }
 0x1cd   : > { %p2290_p10 = pneg %p2289_p9 }
 0x1cf   : > { %2422 = dma.done.wait (%p2290_p10), %s1933_s19, 2048  }
 0x1d0   : > { %2424 = vsyncadd (%p2290_p10), %s1933_s19, 4294965248  ;;  %s17_s22 = sadd.s32 1, %s2455_s22   ;;  %s3219_s15 = smov %s2431_s16 }
 0x1d1   : > { %p14_p11 = scmp.ge.s32.totalorder %s17_s22, 6   ;;  %s3220_s16 = smov %s2435_s17 }
 0x1d2   : > { %s3221_s17 = smov %s2553_s7  ;;  %s3222_s18 = smov %s2447_s20 }
 0x1d3   : > { %s3223_s19 = smov %s2451_s21  ;;  %s3224_s20 = smov %s3227_s25 }
 0x1d4   : > { %s3225_s21 = smov %s3231_s26  ;;  %16 = sbr.rel (!%p14_p11) target bundleno = 5 (0x5), region = 82 }
 0x1d9   :  { %1939 = vsyncpa [#allocation4], 1 }
 0x1da   :  { %1941 = vsyncpa [#allocation4 + $0x1], 1 }

</bundles_post_ra>
